<compile_context>
chip_gen: v6e
topology: v6e:2x2x1
jax: 0.10.0
libtpu: 0.0.40
codegen_flags: <defaults>
</compile_context>

<pallas_src>
import jax
import jax.numpy as jnp
from jax.experimental import pallas as pl
from jax.experimental.pallas import tpu as pltpu


def add_add_layernorm_kernel(a_ref, b_ref, c_ref, gamma_ref, beta_ref, o_ref):
    # x = a + b + c (accumulate in f32)
    x = (a_ref[...].astype(jnp.float32)
         + b_ref[...].astype(jnp.float32)
         + c_ref[...].astype(jnp.float32))

    c_dim = x.shape[-1]
    inv_c = jnp.float32(1.0 / c_dim)

    # One pass over the slab: both reductions are independent -> XLUs co-issue.
    s1 = jnp.sum(x, axis=-1, keepdims=True)          # (R, 1)
    s2 = jnp.sum(x * x, axis=-1, keepdims=True)      # (R, 1)

    mean = s1 * inv_c
    var = s2 * inv_c - mean * mean
    inv_std = jax.lax.rsqrt(var + jnp.float32(1e-5))  # EUP path

    gamma = gamma_ref[...].astype(jnp.float32)        # (1, C)
    beta = beta_ref[...].astype(jnp.float32)          # (1, C)

    # Hoisted affine: y = x * scale + shift
    scale = inv_std * gamma                           # (R,1)*(1,C) -> (R, C)
    shift = beta - mean * scale                       # (R, C)
    o_ref[...] = (x * scale + shift).astype(o_ref.dtype)


def add_add_layernorm(x280, x294, x302, gamma, beta):
    n, h, w, c = x280.shape
    rows = n * h * w
    rows_p = ((rows + 7) // 8) * 8  # pad to sublane multiple (49 -> 56)

    def prep(x):
        x2 = x.reshape(rows, c)
        if rows_p != rows:
            x2 = jnp.pad(x2, ((0, rows_p - rows), (0, 0)))
        return x2

    a = prep(x280)
    b = prep(x294)
    cc = prep(x302)
    g2 = gamma.reshape(1, c)
    b2 = beta.reshape(1, c)

    vmem_spec = pl.BlockSpec(memory_space=pltpu.MemorySpace.VMEM)
    out = pl.pallas_call(
        add_add_layernorm_kernel,
        out_shape=jax.ShapeDtypeStruct((rows_p, c), x280.dtype),
        in_specs=[vmem_spec] * 5,
        out_specs=vmem_spec,
    )(a, b, cc, g2, b2)

    return out[:rows].reshape(n, h, w, c)


if __name__ == "__main__":
    key = jax.random.PRNGKey(0)
    k1, k2, k3 = jax.random.split(key, 3)
    shape = (1, 7, 7, 768)
    x280 = jax.random.normal(k1, shape, dtype=jnp.float32)
    x294 = jax.random.normal(k2, shape, dtype=jnp.float32)
    x302 = jax.random.normal(k3, shape, dtype=jnp.float32)

    # LayerNorm elementwise_affine params, deterministic (PyTorch default init)
    gamma = jnp.ones((768,), dtype=jnp.float32)
    beta = jnp.zeros((768,), dtype=jnp.float32)

    out = add_add_layernorm(x280, x294, x302, gamma, beta)
    out = jax.block_until_ready(out)

    # reference check in plain JAX (two-pass LayerNorm, matches PyTorch module)
    xsum = x280 + x294 + x302
    mean = jnp.mean(xsum, axis=-1, keepdims=True)
    var = jnp.mean((xsum - mean) ** 2, axis=-1, keepdims=True)
    ref = (xsum - mean) / jnp.sqrt(var + 1e-5) * gamma + beta
    assert out.shape == (1, 7, 7, 768)
    assert jnp.max(jnp.abs(out - ref)) < 1e-4

    print("KERNEL_OK")
</pallas_src>

<mosaic_0001>
module attributes {stable_mosaic.version = 11 : i64} {
  func.func @add_add_layernorm_kernel(%arg0: memref<56x768xf32, #tpu.memory_space<vmem>>, %arg1: memref<56x768xf32, #tpu.memory_space<vmem>>, %arg2: memref<56x768xf32, #tpu.memory_space<vmem>>, %arg3: memref<1x768xf32, #tpu.memory_space<vmem>>, %arg4: memref<1x768xf32, #tpu.memory_space<vmem>>, %arg5: memref<56x768xf32, #tpu.memory_space<vmem>>) attributes {dimension_semantics = [], scalar_prefetch = 0 : i64, scratch_operands = 0 : i64, tpu.core_type = #tpu.core_type<tc>} {
    %c0 = arith.constant 0 : index
    %c0_0 = arith.constant 0 : index
    %0 = vector.load %arg0[%c0, %c0_0] : memref<56x768xf32, #tpu.memory_space<vmem>>, vector<56x768xf32>
    %c0_1 = arith.constant 0 : index
    %c0_2 = arith.constant 0 : index
    %1 = vector.load %arg1[%c0_1, %c0_2] : memref<56x768xf32, #tpu.memory_space<vmem>>, vector<56x768xf32>
    %2 = arith.addf %0, %1 : vector<56x768xf32>
    %c0_3 = arith.constant 0 : index
    %c0_4 = arith.constant 0 : index
    %3 = vector.load %arg2[%c0_3, %c0_4] : memref<56x768xf32, #tpu.memory_space<vmem>>, vector<56x768xf32>
    %4 = arith.addf %2, %3 : vector<56x768xf32>
    %cst = arith.constant dense<0.000000e+00> : vector<56xf32>
    %5 = vector.multi_reduction <add>, %4, %cst [1] : vector<56x768xf32> to vector<56xf32>
    %6 = vector.shape_cast %5 : vector<56xf32> to vector<56x1xf32>
    %7 = arith.mulf %4, %4 : vector<56x768xf32>
    %cst_5 = arith.constant dense<0.000000e+00> : vector<56xf32>
    %8 = vector.multi_reduction <add>, %7, %cst_5 [1] : vector<56x768xf32> to vector<56xf32>
    %9 = vector.shape_cast %8 : vector<56xf32> to vector<56x1xf32>
    %cst_6 = arith.constant 0.00130208337 : f32
    %10 = vector.broadcast %cst_6 : f32 to vector<56x1xf32>
    %11 = arith.mulf %6, %10 : vector<56x1xf32>
    %cst_7 = arith.constant 0.00130208337 : f32
    %12 = vector.broadcast %cst_7 : f32 to vector<56x1xf32>
    %13 = arith.mulf %9, %12 : vector<56x1xf32>
    %14 = arith.mulf %11, %11 : vector<56x1xf32>
    %15 = arith.subf %13, %14 : vector<56x1xf32>
    %cst_8 = arith.constant 9.99999974E-6 : f32
    %16 = vector.broadcast %cst_8 : f32 to vector<56x1xf32>
    %17 = arith.addf %15, %16 : vector<56x1xf32>
    %18 = math.rsqrt %17 : vector<56x1xf32>
    %c0_9 = arith.constant 0 : index
    %c0_10 = arith.constant 0 : index
    %19 = vector.load %arg3[%c0_9, %c0_10] : memref<1x768xf32, #tpu.memory_space<vmem>>, vector<1x768xf32>
    %c0_11 = arith.constant 0 : index
    %c0_12 = arith.constant 0 : index
    %20 = vector.load %arg4[%c0_11, %c0_12] : memref<1x768xf32, #tpu.memory_space<vmem>>, vector<1x768xf32>
    %21 = vector.broadcast %18 : vector<56x1xf32> to vector<56x768xf32>
    %22 = vector.broadcast %19 : vector<1x768xf32> to vector<56x768xf32>
    %23 = arith.mulf %21, %22 : vector<56x768xf32>
    %24 = vector.broadcast %11 : vector<56x1xf32> to vector<56x768xf32>
    %25 = arith.mulf %24, %23 : vector<56x768xf32>
    %26 = vector.broadcast %20 : vector<1x768xf32> to vector<56x768xf32>
    %27 = arith.subf %26, %25 : vector<56x768xf32>
    %28 = arith.mulf %4, %23 : vector<56x768xf32>
    %29 = arith.addf %28, %27 : vector<56x768xf32>
    %c0_13 = arith.constant 0 : index
    %c0_14 = arith.constant 0 : index
    %30 = vector.load %arg5[%c0_13, %c0_14] : memref<56x768xf32, #tpu.memory_space<vmem>>, vector<56x768xf32>
    tpu.vector_store %arg5[%c0_13, %c0_14], %29 {strides = array<i32>} : memref<56x768xf32, #tpu.memory_space<vmem>>, vector<56x768xf32>,
    return
  }
}

</mosaic_0001>

<bundles_post_ra>
// kernel: tpu_custom_call.1
= control target key start
LH: loop header
LB: loop body
LE: loop exit
PB: predicated region body
PF: predicated region fallthrough
CT: control target
= control target key end

     0   :  { %10 = vsyncpa [#allocation3], 0  ;;  %s1491_s0 = inlined_call_operand.hbm [shape: f32[56,768], index: 0, kind: input, shape index: {}]   ;;  %s1492_s1 = inlined_call_operand.hbm [shape: f32[56,768], index: 1, kind: input, shape index: {}]   ;;  %s1493_s2 = inlined_call_operand.hbm [shape: f32[56,768], index: 2, kind: input, shape index: {}]   ;;  %s1494_s3 = inlined_call_operand.hbm [shape: f32[1,768], index: 3, kind: input, shape index: {}]   ;;  %s1495_s4 = inlined_call_operand.vmem [shape: f32[1,768], index: 4, kind: input, shape index: {}]   ;;  %s1496_s5 = inlined_call_operand.hbm [shape: f32[56,768], index: 5, kind: output, shape index: {}]  }
   0x1   :  { %11 = vsyncpa [#allocation6], 0 }
   0x2   :  { %12 = vsyncpa [#allocation9], 0 }
   0x3   :  { %13 = vsyncpa [#allocation4], 0  ;;  %s930_s18 = smov [#allocation5]   ;;  %s931_s20 = smov [#allocation2]  }
   0x4   :  { %s31_s19 = sshll.u32 %s930_s18, 4  ;;  %s19_s21 = sshll.u32 %s931_s20, 4  ;;  %s32_s19 = int_to_ptr.vmem [resolvable:$true] %s31_s19  ;;  %s20_s21 = int_to_ptr.vmem [resolvable:$true] %s19_s21 }
   0x5   :  { %s830_s22 = scalar_lea.vmem %s32_s19, 5376  ;;  %p835_p1 = scmp.lt.s32.totalorder %s32_s19, %s32_s19 }
   0x6   :  { %p831_p0 = scmp.ne.s32.totalorder %s32_s19, %s830_s22  ;;  %p836_p2 = scmp.lt.s32.totalorder %s830_s22, %s830_s22 }
   0x8   :  { %p837_p3 = por %p836_p2, %p835_p1 }
   0xa   :  { %p838_p4 = pnand %p837_p3, %p831_p0 }
   0xc   :  { %841 = shalt.err (!%p838_p4)
}
   0xd   :  { %s932_s23 = smov 768   ;;  %s933_s24 = smov 48  }
   0xe   :  { %37 = dma.hbm_to_vmem [thread:$0]  %s1492_s1, 5376, %s32_s19, [#allocation6], %s932_s23, %s932_s23, %s933_s24  }
   0xf   :  { %s850_s27 = scalar_lea.vmem %s20_s21, 5376  ;;  %p855_p6 = scmp.lt.s32.totalorder %s20_s21, %s20_s21 }
  0x10   :  { %p851_p5 = scmp.ne.s32.totalorder %s20_s21, %s850_s27  ;;  %p856_p7 = scmp.lt.s32.totalorder %s850_s27, %s850_s27 }
  0x12   :  { %p857_p8 = por %p856_p7, %p855_p6 }
  0x14   :  { %p858_p9 = pnand %p857_p8, %p851_p5 }
  0x16   :  { %861 = shalt.err (!%p858_p9)
}
  0x17   :  { %25 = dma.hbm_to_vmem [thread:$0]  %s1491_s0, 5376, %s20_s21, [#allocation3], %s932_s23, %s932_s23, %s933_s24  }
  0x18   :  { %s934_s30 = smov [#allocation7]   ;;  %s935_s7 = smov [#allocation8]  }
  0x19   :  { %s43_s6 = sshll.u32 %s934_s30, 4  ;;  %s56_s8 = sshll.u32 %s935_s7, 4  ;;  %s44_s6 = int_to_ptr.vmem [resolvable:$true] %s43_s6  ;;  %s57_s8 = int_to_ptr.vmem [resolvable:$true] %s56_s8 }
  0x1a   :  { %s870_s1 = scalar_lea.vmem %s44_s6, 5376  ;;  %p875_p11 = scmp.lt.s32.totalorder %s44_s6, %s44_s6 }
  0x1b   :  { %p871_p10 = scmp.ne.s32.totalorder %s44_s6, %s870_s1  ;;  %p876_p12 = scmp.lt.s32.totalorder %s870_s1, %s870_s1 }
  0x1d   :  { %p877_p13 = por %p876_p12, %p875_p11 }
  0x1f   :  { %p878_p0 = pnand %p877_p13, %p871_p10 }
  0x21   :  { %881 = shalt.err (!%p878_p0)
}
  0x22   :  { %49 = dma.hbm_to_vmem [thread:$0]  %s1493_s2, 5376, %s44_s6, [#allocation6], %s932_s23, %s932_s23, %s933_s24  }
  0x23   :  { %s890_s0 = scalar_lea.vmem %s57_s8, 96  ;;  %p895_p2 = scmp.lt.s32.totalorder %s57_s8, %s57_s8 }
  0x24   :  { %p891_p1 = scmp.ne.s32.totalorder %s57_s8, %s890_s0  ;;  %p896_p3 = scmp.lt.s32.totalorder %s890_s0, %s890_s0 }
  0x26   :  { %p897_p4 = por %p896_p3, %p895_p2 }
  0x28   :  { %p898_p5 = pnand %p897_p4, %p891_p1 }
  0x2a   :  { %901 = shalt.err (!%p898_p5)
}
  0x2b   :  { %59 = dma.hbm_to_vmem [thread:$0]  %s1494_s3, 96, %s57_s8, [#allocation9]  }
  0x2c   :  { %922 = dma.done.wait [#allocation3], 5376  }
  0x2d   :  { %923 = vsyncadd [#allocation3], 4294961920 }
  0x2e   :  { %924 = dma.done.wait [#allocation6], 10752  }
  0x2f   :  { %925 = vsyncadd [#allocation6], 4294956544 }
  0x30   :  { %926 = dma.done.wait [#allocation9], 96  }
  0x31   :  { %927 = vsyncadd [#allocation9], 4294967200  ;;  %v86_v0 = vld [vmem:[#allocation2 + $0x60] sm:$0xff]  ;;  %v87_v1 = vld [vmem:[#allocation2 + $0x68] sm:$0xff] }
  0x32   :  { %v88_v2 = vld [vmem:[#allocation2 + $0x70] sm:$0xff]  ;;  %v89_v3 = vld [vmem:[#allocation2 + $0x78] sm:$0xff]  ;;  %v90_v4 = vld [vmem:[#allocation2 + $0x80] sm:$0xff] }
  0x33   :  { %v91_v5 = vld [vmem:[#allocation2 + $0x88] sm:$0xff]  ;;  %v128_v6 = vld [vmem:[#allocation5 + $0x60] sm:$0xff]  ;;  %v129_v7 = vld [vmem:[#allocation5 + $0x68] sm:$0xff] }
  0x34   :  { %v130_v8 = vld [vmem:[#allocation5 + $0x70] sm:$0xff]  ;;  %v131_v9 = vld [vmem:[#allocation5 + $0x78] sm:$0xff]  ;;  %v132_v10 = vld [vmem:[#allocation5 + $0x80] sm:$0xff]  ;;  %v170_v12 = vadd.f32 %v128_v6, %v86_v0  ;;  %v171_v13 = vadd.f32 %v129_v7, %v87_v1 }
  0x35   :  { %v133_v11 = vld [vmem:[#allocation5 + $0x88] sm:$0xff]  ;;  %v172_v14 = vadd.f32 %v130_v8, %v88_v2  ;;  %v173_v15 = vadd.f32 %v131_v9, %v89_v3  ;;  %v174_v16 = vadd.f32 %v132_v10, %v90_v4  ;;  %v212_v18 = vld [vmem:[#allocation7 + $0x60] sm:$0xff]  ;;  %v213_v19 = vld [vmem:[#allocation7 + $0x68] sm:$0xff] }
  0x36   :  { %v175_v17 = vadd.f32 %v133_v11, %v91_v5  ;;  %v214_v20 = vld [vmem:[#allocation7 + $0x70] sm:$0xff]  ;;  %v215_v21 = vld [vmem:[#allocation7 + $0x78] sm:$0xff]  ;;  %v216_v22 = vld [vmem:[#allocation7 + $0x80] sm:$0xff]  ;;  %v988_v24 = vadd.f32 %v212_v18, %v170_v12  ;;  %v990_v25 = vadd.f32 %v213_v19, %v171_v13 }
  0x37   :  { %v217_v23 = vld [vmem:[#allocation7 + $0x88] sm:$0xff]  ;;  %v992_v26 = vadd.f32 %v214_v20, %v172_v14  ;;  %v74_v27 = vld [vmem:[#allocation2] sm:$0xff]  ;;  %v76_v29 = vld [vmem:[#allocation2 + $0x10] sm:$0xff]  ;;  %v994_v30 = vadd.f32 %v215_v21, %v173_v15  ;;  %v998_v34 = vadd.f32 %v216_v22, %v174_v16 }
  0x38   :  { %v75_v28 = vld [vmem:[#allocation2 + $0x8] sm:$0xff]  ;;  %v298_v31 = vadd.f32 %v990_v25, %v988_v24  ;;  %v77_v32 = vld [vmem:[#allocation2 + $0x18] sm:$0xff]  ;;  %v78_v33 = vld [vmem:[#allocation2 + $0x20] sm:$0xff]  ;;  %v1000_v35 = vadd.f32 %v217_v23, %v175_v17  ;;  %v345_v52 = vmul.f32 %v988_v24, %v988_v24  ;;  %v346_v53 = vmul.f32 %v990_v25, %v990_v25 }
  0x39   :  { %v79_v36 = vld [vmem:[#allocation2 + $0x28] sm:$0xff]  ;;  %v116_v37 = vld [vmem:[#allocation5] sm:$0xff]  ;;  %v117_v38 = vld [vmem:[#allocation5 + $0x8] sm:$0xff]  ;;  %v347_v0 = vmul.f32 %v992_v26, %v992_v26  ;;  %v1018_v1 = vmul.f32 %v994_v30, %v994_v30  ;;  %v1022_v2 = vmul.f32 %v998_v34, %v998_v34 }
  0x3a   :  { %v118_v39 = vld [vmem:[#allocation5 + $0x10] sm:$0xff]  ;;  %v299_v40 = vadd.f32 %v298_v31, %v992_v26  ;;  %v119_v41 = vld [vmem:[#allocation5 + $0x18] sm:$0xff]  ;;  %v120_v42 = vld [vmem:[#allocation5 + $0x20] sm:$0xff]  ;;  %v158_v44 = vadd.f32 %v116_v37, %v74_v27  ;;  %v159_v45 = vadd.f32 %v117_v38, %v75_v28  ;;  %v1026_v3 = vmul.f32 %v1000_v35, %v1000_v35 }
  0x3b   :  { %v121_v43 = vld [vmem:[#allocation5 + $0x28] sm:$0xff]  ;;  %v160_v46 = vadd.f32 %v118_v39, %v76_v29  ;;  %v161_v47 = vadd.f32 %v119_v41, %v77_v32  ;;  %v162_v48 = vadd.f32 %v120_v42, %v78_v33  ;;  %v200_v49 = vld [vmem:[#allocation7] sm:$0xff]  ;;  %v201_v50 = vld [vmem:[#allocation7 + $0x8] sm:$0xff]  ;;  %v389_v17 = vadd.f32 %v346_v53, %v345_v52 }
  0x3c   :  { %v202_v51 = vld [vmem:[#allocation7 + $0x10] sm:$0xff]  ;;  %v300_v54 = vadd.f32 %v299_v40, %v994_v30  ;;  %v203_v55 = vld [vmem:[#allocation7 + $0x18] sm:$0xff]  ;;  %v204_v56 = vld [vmem:[#allocation7 + $0x20] sm:$0xff]  ;;  %v1008_v57 = vadd.f32 %v200_v49, %v158_v44  ;;  %v1010_v58 = vadd.f32 %v201_v50, %v159_v45  ;;  %v163_v5 = vadd.f32 %v121_v43, %v79_v36 }
  0x3d   :  { %v1012_v59 = vadd.f32 %v202_v51, %v160_v46  ;;  %v205_v60 = vld [vmem:[#allocation7 + $0x28] sm:$0xff]  ;;  %v92_v61 = vld [vmem:[#allocation2 + $0x90] sm:$0xff]  ;;  %v93_v62 = vld [vmem:[#allocation2 + $0x98] sm:$0xff]  ;;  %v1029_v6 = vadd.f32 %v203_v55, %v161_v47  ;;  %v1033_v11 = vadd.f32 %v204_v56, %v162_v48  ;;  %v390_v50 = vadd.f32 %v389_v17, %v347_v0 }
  0x3e   :  { %v94_v63 = vld [vmem:[#allocation2 + $0xa0] sm:$0xff]  ;;  %v301_v4 = vadd.f32 %v300_v54, %v998_v34  ;;  %v284_v7 = vadd.f32 %v1010_v58, %v1008_v57  ;;  %v95_v8 = vld [vmem:[#allocation2 + $0xa8] sm:$0xff]  ;;  %v96_v9 = vld [vmem:[#allocation2 + $0xb0] sm:$0xff]  ;;  %v333_v15 = vmul.f32 %v1008_v57, %v1008_v57  ;;  %v334_v16 = vmul.f32 %v1010_v58, %v1010_v58 }
  0x3f   :  { %v97_v10 = vld [vmem:[#allocation2 + $0xb8] sm:$0xff]  ;;  %v134_v12 = vld [vmem:[#allocation5 + $0x90] sm:$0xff]  ;;  %v135_v13 = vld [vmem:[#allocation5 + $0x98] sm:$0xff]  ;;  %v1041_v38 = vadd.f32 %v205_v60, %v163_v5  ;;  %v335_v48 = vmul.f32 %v1012_v59, %v1012_v59  ;;  %v336_v60 = vmul.f32 %v1029_v6, %v1029_v6 }
  0x40   :  { %v136_v14 = vld [vmem:[#allocation5 + $0xa0] sm:$0xff]  ;;  %v302_v18 = vadd.f32 %v301_v4, %v1000_v35  ;;  %v285_v19 = vadd.f32 %v284_v7, %v1012_v59  ;;  %v137_v20 = vld [vmem:[#allocation5 + $0xa8] sm:$0xff]  ;;  %v138_v21 = vld [vmem:[#allocation5 + $0xb0] sm:$0xff]  ;;  %v176_v23 = vadd.f32 %v134_v12, %v92_v61  ;;  %v177_v27 = vadd.f32 %v135_v13, %v93_v62 }
  0x41   :  { %v139_v22 = vld [vmem:[#allocation5 + $0xb8] sm:$0xff]  ;;  %v178_v28 = vadd.f32 %v136_v14, %v94_v63  ;;  %v179_v29 = vadd.f32 %v137_v20, %v95_v8  ;;  %v180_v31 = vadd.f32 %v138_v21, %v96_v9  ;;  %v218_v33 = vld [vmem:[#allocation7 + $0x90] sm:$0xff]  ;;  %v219_v36 = vld [vmem:[#allocation7 + $0x98] sm:$0xff]  ;;  %v375_v49 = vadd.f32 %v334_v16, %v333_v15 }
  0x42   :  { %v181_v32 = vadd.f32 %v139_v22, %v97_v10  ;;  %v220_v37 = vld [vmem:[#allocation7 + $0xa0] sm:$0xff]  ;;  %303 = vadd.xlane.f32.xlu1 %v302_v18  ;;  %v286_v39 = vadd.f32 %v285_v19, %v1029_v6  ;;  %v221_v40 = vld [vmem:[#allocation7 + $0xa8] sm:$0xff]  ;;  %v222_v41 = vld [vmem:[#allocation7 + $0xb0] sm:$0xff]  ;;  %v1044_v43 = vadd.f32 %v218_v33, %v176_v23  ;;  %v1046_v44 = vadd.f32 %v219_v36, %v177_v27 }
  0x43   :  { %v223_v42 = vld [vmem:[#allocation7 + $0xb8] sm:$0xff]  ;;  %v1048_v45 = vadd.f32 %v220_v37, %v178_v28  ;;  %v80_v46 = vld [vmem:[#allocation2 + $0x30] sm:$0xff]  ;;  %v1053_v52 = vadd.f32 %v221_v40, %v179_v29  ;;  %v82_v54 = vld [vmem:[#allocation2 + $0x40] sm:$0xff]  ;;  %v1059_v61 = vadd.f32 %v222_v41, %v180_v31  ;;  %v1065_v7 = vmul.f32 %v1033_v11, %v1033_v11 }
  0x44   :  { %1522 = vst [vmem:[#allocation15_spill] sm:$0xff] %v1044_v43  ;;  %1523 = vst [vmem:[#allocation16_spill] sm:$0xff] %v1046_v44  ;;  %v81_v47 = vld [vmem:[#allocation2 + $0x38] sm:$0xff]  ;;  %v287_v51 = vadd.f32 %v286_v39, %v1033_v11  ;;  %v305_v53 = vadd.f32 %v1046_v44, %v1044_v43  ;;  %v83_v55 = vld [vmem:[#allocation2 + $0x48] sm:$0xff]  ;;  %v1061_v62 = vadd.f32 %v223_v42, %v181_v32 }
  0x45   :  { %1524 = vst [vmem:[#allocation17_spill] sm:$0xff] %v1048_v45  ;;  %1525 = vst [vmem:[#allocation18_spill] sm:$0xff] %v1053_v52  ;;  %v84_v56 = vld [vmem:[#allocation2 + $0x50] sm:$0xff]  ;;  %v85_v63 = vld [vmem:[#allocation2 + $0x58] sm:$0xff]  ;;  %v1069_v8 = vmul.f32 %v1041_v38, %v1041_v38  ;;  %v376_v23 = vadd.f32 %v375_v49, %v335_v48  ;;  %v391_v33 = vadd.f32 %v390_v50, %v1018_v1 }
  0x46   :  { %1526 = vst [vmem:[#allocation19_spill] sm:$0xff] %v1059_v61  ;;  %1527 = vst [vmem:[#allocation20_spill] sm:$0xff] %v1061_v62  ;;  %v122_v4 = vld [vmem:[#allocation5 + $0x30] sm:$0xff]  ;;  %v123_v0 = vld [vmem:[#allocation5 + $0x38] sm:$0xff]  ;;  %v288_v9 = vadd.f32 %v287_v51, %v1041_v38  ;;  %v306_v10 = vadd.f32 %v305_v53, %v1048_v45  ;;  %v1083_v42 = vmul.f32 %v1044_v43, %v1044_v43 }
  0x47   :  { %v124_v5 = vld [vmem:[#allocation5 + $0x40] sm:$0xff]  ;;  %v125_v12 = vld [vmem:[#allocation5 + $0x48] sm:$0xff]  ;;  %v126_v13 = vld [vmem:[#allocation5 + $0x50] sm:$0xff]  ;;  %v164_v15 = vadd.f32 %v122_v4, %v80_v46  ;;  %v165_v16 = vadd.f32 %v123_v0, %v81_v47  ;;  %v1087_v46 = vmul.f32 %v1046_v44, %v1046_v44  ;;  %v1091_v47 = vmul.f32 %v1048_v45, %v1048_v45 }
  0x48   :  { %v127_v14 = vld [vmem:[#allocation5 + $0x58] sm:$0xff]  ;;  %v166_v17 = vadd.f32 %v124_v5, %v82_v54  ;;  %v167_v18 = vadd.f32 %v125_v12, %v83_v55  ;;  %v168_v19 = vadd.f32 %v126_v13, %v84_v56  ;;  %v206_v20 = vld [vmem:[#allocation7 + $0x30] sm:$0xff]  ;;  %v207_v21 = vld [vmem:[#allocation7 + $0x38] sm:$0xff]  ;;  %289 = vadd.xlane.f32.xlu0 %v288_v9  ;;  %v307_v27 = vadd.f32 %v306_v10, %v1053_v52 }
  0x49   :  { %v208_v22 = vld [vmem:[#allocation7 + $0x40] sm:$0xff]  ;;  %v209_v28 = vld [vmem:[#allocation7 + $0x48] sm:$0xff]  ;;  %v210_v29 = vld [vmem:[#allocation7 + $0x50] sm:$0xff]  ;;  %v1074_v31 = vadd.f32 %v206_v20, %v164_v15  ;;  %v1076_v32 = vadd.f32 %v207_v21, %v165_v16  ;;  %v169_v48 = vadd.f32 %v127_v14, %v85_v63  ;;  %v377_v5 = vadd.f32 %v376_v23, %v336_v60 }
  0x4a   :  { %v211_v36 = vld [vmem:[#allocation7 + $0x58] sm:$0xff]  ;;  %v1079_v37 = vadd.f32 %v208_v22, %v166_v17  ;;  %v104_v39 = vld [vmem:[#allocation2 + $0xf0] sm:$0xff]  ;;  %v106_v41 = vld [vmem:[#allocation2 + $0x100] sm:$0xff]  ;;  %v308_v1 = vadd.f32 %v307_v27, %v1059_v61  ;;  %v1094_v49 = vadd.f32 %v209_v28, %v167_v18  ;;  %v1098_v55 = vadd.f32 %v210_v29, %v168_v19 }
  0x4b   :  { %1528 = vst [vmem:[#allocation21_spill] sm:$0xff] %v1076_v32  ;;  %v105_v40 = vld [vmem:[#allocation2 + $0xf8] sm:$0xff]  ;;  %v291_v50 = vadd.f32 %v1076_v32, %v1074_v31  ;;  %v107_v51 = vld [vmem:[#allocation2 + $0x108] sm:$0xff]  ;;  %v108_v53 = vld [vmem:[#allocation2 + $0x110] sm:$0xff]  ;;  %v339_v9 = vmul.f32 %v1074_v31, %v1074_v31  ;;  %v340_v63 = vmul.f32 %v1076_v32, %v1076_v32  ;;  %v1106_v27 = vadd.f32 %v211_v36, %v169_v48 }
  0x4c   :  { %1529 = vst [vmem:[#allocation22_spill] sm:$0xff] %v1079_v37  ;;  %1530 = vst [vmem:[#allocation23_spill] sm:$0xff] %v1094_v49  ;;  %v109_v54 = vld [vmem:[#allocation2 + $0x118] sm:$0xff]  ;;  %v146_v56 = vld [vmem:[#allocation5 + $0xf0] sm:$0xff]  ;;  %v309_v10 = vadd.f32 %v308_v1, %v1061_v62  ;;  %v1119_v36 = vmul.f32 %v1053_v52, %v1053_v52 }
  0x4d   :  { %v147_v4 = vld [vmem:[#allocation5 + $0xf8] sm:$0xff]  ;;  %v148_v0 = vld [vmem:[#allocation5 + $0x100] sm:$0xff]  ;;  %v292_v12 = vadd.f32 %v291_v50, %v1079_v37  ;;  %v149_v13 = vld [vmem:[#allocation5 + $0x108] sm:$0xff]  ;;  %v188_v16 = vadd.f32 %v146_v56, %v104_v39  ;;  %1531 = vst [vmem:[#allocation24_spill] sm:$0xff] %v1106_v27 }
  0x4e   :  { %v150_v14 = vld [vmem:[#allocation5 + $0x110] sm:$0xff]  ;;  %v151_v15 = vld [vmem:[#allocation5 + $0x118] sm:$0xff]  ;;  %v189_v17 = vadd.f32 %v147_v4, %v105_v40  ;;  %v190_v18 = vadd.f32 %v148_v0, %v106_v41  ;;  %v191_v19 = vadd.f32 %v149_v13, %v107_v51  ;;  %v230_v60 = vld [vmem:[#allocation7 + $0xf0] sm:$0xff]  ;;  %310 = vadd.xlane.f32.xlu1 %v309_v10  ;;  %v341_v13 = vmul.f32 %v1079_v37, %v1079_v37 }
  0x4f   :  { %v192_v20 = vadd.f32 %v150_v14, %v108_v53  ;;  %v193_v21 = vadd.f32 %v151_v15, %v109_v54  ;;  %v231_v22 = vld [vmem:[#allocation7 + $0xf8] sm:$0xff]  ;;  %v232_v23 = vld [vmem:[#allocation7 + $0x100] sm:$0xff]  ;;  %v293_v28 = vadd.f32 %v292_v12, %v1094_v49  ;;  %v233_v29 = vld [vmem:[#allocation7 + $0x108] sm:$0xff]  ;;  %v1109_v45 = vadd.f32 %v230_v60, %v188_v16 }
  0x50   :  { %v234_v1 = vld [vmem:[#allocation7 + $0x110] sm:$0xff]  ;;  %v235_v50 = vld [vmem:[#allocation7 + $0x118] sm:$0xff]  ;;  %v1111_v44 = vadd.f32 %v231_v22, %v189_v17  ;;  %v1113_v39 = vadd.f32 %v232_v23, %v190_v18  ;;  %v98_v40 = vld [vmem:[#allocation2 + $0xc0] sm:$0xff]  ;;  %v378_v53 = vadd.f32 %v377_v5, %v1065_v7  ;;  %v392_v54 = vadd.f32 %v391_v33, %v1022_v2 }
  0x51   :  { %1532 = vst [vmem:[#allocation25_spill] sm:$0xff] %v1109_v45  ;;  %v99_v41 = vld [vmem:[#allocation2 + $0xc8] sm:$0xff]  ;;  %v100_v51 = vld [vmem:[#allocation2 + $0xd0] sm:$0xff]  ;;  %v294_v48 = vadd.f32 %v293_v28, %v1098_v55  ;;  %v1122_v56 = vadd.f32 %v233_v29, %v191_v19  ;;  %v101_v0 = vld [vmem:[#allocation2 + $0xd8] sm:$0xff]  ;;  %v1128_v7 = vadd.f32 %v234_v1, %v192_v20  ;;  %v1130_v2 = vadd.f32 %v235_v50, %v193_v21 }
  0x52   :  { %1533 = vst [vmem:[#allocation26_spill] sm:$0xff] %v1111_v44  ;;  %1534 = vst [vmem:[#allocation27_spill] sm:$0xff] %v1113_v39  ;;  %v319_v4 = vadd.f32 %v1111_v44, %v1109_v45  ;;  %v102_v10 = vld [vmem:[#allocation2 + $0xe0] sm:$0xff]  ;;  %v103_v12 = vld [vmem:[#allocation2 + $0xe8] sm:$0xff]  ;;  %v342_v15 = vmul.f32 %v1094_v49, %v1094_v49  ;;  %v382_v16 = vadd.f32 %v340_v63, %v339_v9 }
  0x53   :  { %1535 = vst [vmem:[#allocation28_spill] sm:$0xff] %v1122_v56  ;;  %1536 = vst [vmem:[#allocation29_spill] sm:$0xff] %v1128_v7  ;;  %v140_v33 = vld [vmem:[#allocation5 + $0xc0] sm:$0xff]  ;;  %v141_v5 = vld [vmem:[#allocation5 + $0xc8] sm:$0xff]  ;;  %v295_v17 = vadd.f32 %v294_v48, %v1106_v27 }
  0x54   :  { %1537 = vst [vmem:[#allocation30_spill] sm:$0xff] %v1130_v2  ;;  %v142_v14 = vld [vmem:[#allocation5 + $0xd0] sm:$0xff]  ;;  %v320_v18 = vadd.f32 %v319_v4, %v1113_v39  ;;  %v143_v19 = vld [vmem:[#allocation5 + $0xd8] sm:$0xff]  ;;  %v144_v60 = vld [vmem:[#allocation5 + $0xe0] sm:$0xff]  ;;  %v182_v23 = vadd.f32 %v140_v33, %v98_v40  ;;  %v183_v28 = vadd.f32 %v141_v5, %v99_v41  ;;  %v383_v32 = vadd.f32 %v382_v16, %v341_v13 }
  0x55   :  { %v145_v22 = vld [vmem:[#allocation5 + $0xe8] sm:$0xff]  ;;  %v184_v20 = vadd.f32 %v142_v14, %v100_v51  ;;  %v185_v29 = vadd.f32 %v143_v19, %v101_v0  ;;  %v186_v21 = vadd.f32 %v144_v60, %v102_v10  ;;  %v224_v50 = vld [vmem:[#allocation7 + $0xc0] sm:$0xff]  ;;  %v225_v52 = vld [vmem:[#allocation7 + $0xc8] sm:$0xff]  ;;  %296 = vadd.xlane.f32.xlu0 %v295_v17  ;;  %v379_v41 = vadd.f32 %v378_v53, %v1069_v8 }
  0x56   :  { %v187_v1 = vadd.f32 %v145_v22, %v103_v12  ;;  %v226_v43 = vld [vmem:[#allocation7 + $0xd0] sm:$0xff]  ;;  %v321_v49 = vadd.f32 %v320_v18, %v1122_v56  ;;  %v227_v9 = vld [vmem:[#allocation7 + $0xd8] sm:$0xff]  ;;  %v228_v63 = vld [vmem:[#allocation7 + $0xe0] sm:$0xff]  ;;  %v1137_v37 = vadd.f32 %v224_v50, %v182_v23  ;;  %v1139_v4 = vadd.f32 %v225_v52, %v183_v28 }
  0x57   :  { %v229_v48 = vld [vmem:[#allocation7 + $0xe8] sm:$0xff]  ;;  %v1141_v40 = vadd.f32 %v226_v43, %v184_v20  ;;  %v110_v51 = vld [vmem:[#allocation2 + $0x120] sm:$0xff]  ;;  %v112_v10 = vld [vmem:[#allocation2 + $0x130] sm:$0xff]  ;;  %v1145_v12 = vadd.f32 %v392_v54, %v1026_v3  ;;  %v1149_v33 = vmul.f32 %v1098_v55, %v1098_v55  ;;  %v1152_v14 = vadd.f32 %v227_v9, %v185_v29 }
  0x58   :  { %v111_v0 = vld [vmem:[#allocation2 + $0x128] sm:$0xff]  ;;  %v322_v5 = vadd.f32 %v321_v49, %v1128_v7  ;;  %v312_v43 = vadd.f32 %v1139_v4, %v1137_v37  ;;  %v113_v52 = vld [vmem:[#allocation2 + $0x138] sm:$0xff]  ;;  %v114_v13 = vld [vmem:[#allocation2 + $0x140] sm:$0xff]  ;;  %v1158_v53 = vmul.f32 %v1106_v27, %v1106_v27  ;;  %v1160_v3 = vadd.f32 %v228_v63, %v186_v21 }
  0x59   :  { %v115_v8 = vld [vmem:[#allocation2 + $0x148] sm:$0xff]  ;;  %v1162_v54 = vadd.f32 %v229_v48, %v187_v1  ;;  %v152_v16 = vld [vmem:[#allocation5 + $0x120] sm:$0xff]  ;;  %v153_v17 = vld [vmem:[#allocation5 + $0x128] sm:$0xff]  ;;  %v384_v49 = vadd.f32 %v383_v32, %v342_v15  ;;  %v1166_v19 = vmul.f32 %v1059_v61, %v1059_v61  ;;  %v357_v32 = vmul.f32 %v1137_v37, %v1137_v37 }
  0x5a   :  { %v154_v18 = vld [vmem:[#allocation5 + $0x130] sm:$0xff]  ;;  %v323_v60 = vadd.f32 %v322_v5, %v1130_v2  ;;  %v313_v22 = vadd.f32 %v312_v43, %v1141_v40  ;;  %v155_v23 = vld [vmem:[#allocation5 + $0x138] sm:$0xff]  ;;  %v156_v28 = vld [vmem:[#allocation5 + $0x140] sm:$0xff]  ;;  %v194_v29 = vadd.f32 %v152_v16, %v110_v51  ;;  %v195_v21 = vadd.f32 %v153_v17, %v111_v0 }
  0x5b   :  { %v157_v20 = vld [vmem:[#allocation5 + $0x148] sm:$0xff]  ;;  %v196_v50 = vadd.f32 %v154_v18, %v112_v10  ;;  %v197_v1 = vadd.f32 %v155_v23, %v113_v52  ;;  %v236_v9 = vld [vmem:[#allocation7 + $0x120] sm:$0xff]  ;;  %v237_v63 = vld [vmem:[#allocation7 + $0x128] sm:$0xff]  ;;  %v358_v15 = vmul.f32 %v1139_v4, %v1139_v4  ;;  %v198_v43 = vadd.f32 %v156_v28, %v114_v13 }
  0x5c   :  { %v238_v48 = vld [vmem:[#allocation7 + $0x130] sm:$0xff]  ;;  %324 = vadd.xlane.f32.xlu1 %v323_v60  ;;  %v314_v5 = vadd.f32 %v313_v22, %v1152_v14  ;;  %v239_v61 = vld [vmem:[#allocation7 + $0x138] sm:$0xff]  ;;  %v1175_v27 = vadd.f32 %v236_v9, %v194_v29  ;;  %v1177_v51 = vadd.f32 %v237_v63, %v195_v21  ;;  %v199_v0 = vadd.f32 %v157_v20, %v115_v8  ;;  %v240_v10 = vld [vmem:[#allocation7 + $0x140] sm:$0xff] }
  0x5d   :  { %v1179_v52 = vadd.f32 %v238_v48, %v196_v50  ;;  %v359_v16 = vmul.f32 %v1141_v40, %v1141_v40  ;;  %v360_v17 = vmul.f32 %v1152_v14, %v1152_v14  ;;  %v241_v60 = vld [vmem:[#allocation7 + $0x148] sm:$0xff]  ;;  %v1186_v22 = vadd.f32 %v239_v61, %v197_v1 }
  0x5e   :  { %1538 = vst [vmem:[#allocation31_spill] sm:$0xff] %v1177_v51  ;;  %v315_v18 = vadd.f32 %v314_v5, %v1160_v3  ;;  %v326_v13 = vadd.f32 %v1177_v51, %v1175_v27  ;;  %v361_v8 = vmul.f32 %v1160_v3, %v1160_v3  ;;  %v403_v23 = vadd.f32 %v358_v15, %v357_v32 }
  0x5f   :  { %1539 = vst [vmem:[#allocation32_spill] sm:$0xff] %v1179_v52  ;;  %1540 = vst [vmem:[#allocation33_spill] sm:$0xff] %v1186_v22  ;;  %v396_v28 = vadd.f32 %v1087_v46, %v1083_v42  ;;  %v369_v20 = vmul.f32 %v1175_v27, %v1175_v27  ;;  %v370_v29 = vmul.f32 %v1177_v51, %v1177_v51 }
  0x60   :  { %v316_v21 = vadd.f32 %v315_v18, %v1162_v54  ;;  %380 = vadd.xlane.f32.xlu1 %v379_v41  ;;  %v1199_v61 = vadd.f32 %v240_v10, %v198_v43  ;;  %v327_v50 = vadd.f32 %v326_v13, %v1179_v52  ;;  %v371_v1 = vmul.f32 %v1179_v52, %v1179_v52 }
  0x61   :  { %v1204_v9 = vadd.f32 %v241_v60, %v199_v0  ;;  %v404_v63 = vadd.f32 %v403_v23, %v359_v16  ;;  %v397_v42 = vadd.f32 %v396_v28, %v1091_v47  ;;  %v372_v46 = vmul.f32 %v1186_v22, %v1186_v22 }
  0x62   :  { %1541 = vst [vmem:[#allocation34_spill] sm:$0xff] %v1199_v61  ;;  %317 = vadd.xlane.f32.xlu0 %v316_v21  ;;  %v328_v48 = vadd.f32 %v327_v50, %v1186_v22  ;;  %v417_v32 = vadd.f32 %v370_v29, %v369_v20  ;;  %v363_v41 = vmul.f32 %v1109_v45, %v1109_v45 }
  0x63   :  { %1542 = vst [vmem:[#allocation35_spill] sm:$0xff] %v1204_v9  ;;  %v364_v15 = vmul.f32 %v1111_v44, %v1111_v44  ;;  %v385_v5 = vadd.f32 %v384_v49, %v1149_v33  ;;  %v362_v43 = vmul.f32 %v1162_v54, %v1162_v54  ;;  %v405_v0 = vadd.f32 %v404_v63, %v360_v17 }
  0x64   :  { %v365_v47 = vmul.f32 %v1113_v39, %v1113_v39  ;;  %v329_v10 = vadd.f32 %v328_v48, %v1199_v61  ;;  %394 = vadd.xlane.f32.xlu1 %v1145_v12  ;;  %v398_v16 = vadd.f32 %v397_v42, %v1119_v36  ;;  %v373_v18 = vmul.f32 %v1199_v61, %v1199_v61 }
  0x65   :  { %v418_v60 = vadd.f32 %v417_v32, %v371_v1  ;;  %v406_v13 = vadd.f32 %v405_v0, %v361_v8  ;;  %v366_v33 = vmul.f32 %v1122_v56, %v1122_v56  ;;  %v410_v49 = vadd.f32 %v364_v15, %v363_v41 }
  0x66   :  { %v330_v17 = vadd.f32 %v329_v10, %v1204_v9  ;;  %v374_v23 = vmul.f32 %v1204_v9, %v1204_v9  ;;  %v356_v12 = vmul.f32 %v1061_v62, %v1061_v62  ;;  %v386_v29 = vadd.f32 %v385_v5, %v1158_v53 }
  0x67   :  { %v419_v28 = vadd.f32 %v418_v60, %v372_v46  ;;  %v407_v20 = vadd.f32 %v406_v13, %v362_v43  ;;  %v411_v36 = vadd.f32 %v410_v49, %v365_v47  ;;  %v399_v8 = vadd.f32 %v398_v16, %v1166_v19 }
  0x68   :  { %331 = vadd.xlane.f32.xlu0 %v330_v17  ;;  %v367_v50 = vmul.f32 %v1128_v7, %v1128_v7  ;;  %v368_v46 = vmul.f32 %v1130_v2, %v1130_v2  ;;  %v469_v60 = vlaneseq }
  0x69   :  { %v420_v21 = vadd.f32 %v419_v28, %v373_v18  ;;  %408 = vadd.xlane.f32.xlu1 %v407_v20  ;;  %v412_v1 = vadd.f32 %v411_v36, %v366_v33  ;;  %v400_v42 = vadd.f32 %v399_v8, %v356_v12 }
  0x6a   :  { %v470_v20 = vshrl.u32 %v469_v60, 7 }
  0x6b   :  { %v421_v63 = vadd.f32 %v420_v21, %v374_v23  ;;  %v413_v48 = vadd.f32 %v412_v1, %v367_v50 }
  0x6c   :  { %387 = vadd.xlane.f32.xlu0 %v386_v29 }
  0x6d   :  { %422 = vadd.xlane.f32.xlu1 %v421_v63  ;;  %v414_v32 = vadd.f32 %v413_v48, %v368_v46  ;;  %v475_v46 = vsub.s32 1, %v470_v20  ;;  %v479_v48 = vsub.s32 2, %v470_v20 }
  0x70   :  { %401 = vadd.xlane.f32.xlu0 %v400_v42  ;;  %v471_v42 = vsub.s32 0, %v470_v20 }
  0x74   :  { %415 = vadd.xlane.f32.xlu0 %v414_v32  ;;  %v466_v32 = vld [vmem:[#allocation8] sm:$0x3f] }
  0xcb   :  { %v304_v53 = vpop.xlane.xlu1 %303 }
  0xcc   :  { %v1239_v47 = vmul.f32 0.0013020834, %v304_v53  ;;  %v483_v53 = vsub.s32 3, %v470_v20 }
  0xce   :  { %v440_v17 = vmul.f32 %v1239_v47, %v1239_v47 }
  0xd1   :  { %v290_v41 = vpop.xlane.xlu0 %289 }
  0xd2   :  { %v1237_v43 = vmul.f32 0.0013020834, %v290_v41  ;;  %v487_v41 = vsub.s32 4, %v470_v20 }
  0xd4   :  { %v438_v16 = vmul.f32 %v1237_v43, %v1237_v43 }
  0xd7   :  { %v311_v19 = vpop.xlane.xlu1 %310 }
  0xde   :  { %v297_v15 = vpop.xlane.xlu0 %296 }
  0xdf   :  { %v1247_v29 = vmul.f32 0.0013020834, %v297_v15  ;;  %v491_v15 = vsub.s32 5, %v470_v20 }
  0xe5   :  { %v325_v5 = vpop.xlane.xlu1 %324 }
  0xe9   :  { %v381_v0 = vpop.xlane.xlu1 %380 }
  0xea   :  { %v431_v10 = vmul.f32 0.0013020834, %v381_v0 }
  0xeb   :  { %v318_v18 = vpop.xlane.xlu0 %317 }
  0xec   :  { %v445_v13 = vsub.f32 %v431_v10, %v438_v16  ;;  %v1245_v28 = vmul.f32 0.0013020834, %v318_v18  ;;  %v1253_v16 = vmul.f32 0.0013020834, %v311_v19  ;;  %v439_v18 = vmul.f32 %v1247_v29, %v1247_v29 }
  0xed   :  { %v395_v33 = vpop.xlane.xlu1 %394  ;;  %v1266_v19 = vrot.slane %v466_v32, %v479_v48 }
  0xee   :  { %v452_v49 = vadd.f32 1e-05, %v445_v13  ;;  %v433_v23 = vmul.f32 0.0013020834, %v395_v33  ;;  %v442_v63 = vmul.f32 %v1245_v28, %v1245_v28  ;;  %1543 = vst [vmem:[#allocation36_spill] sm:$0xff] %v1253_v16  ;;  %v441_v2 = vmul.f32 %v1253_v16, %v1253_v16 }
  0xf0   :  { %808 = vrsqrt.f32 %v452_v49  ;;  %v447_v12 = vsub.f32 %v433_v23, %v440_v17  ;;  %v467_v23 = vld [vmem:[%s1495_s4] sm:$0x3f]  ;;  %s936_s4 = smov [#allocation10]  }
  0xf1   :  { %v332_v36 = vpop.xlane.xlu0 %331  ;;  %v1278_v56 = vrot.slane %v467_v23, %v471_v42  ;;  %v1280_v39 = vrot.slane %v467_v23, %v475_v46  ;;  %s787_s13 = sshll.u32 %s936_s4, 4  ;;  %s788_s13 = int_to_ptr.vmem [resolvable:$true] %s787_s13 }
  0xf2   :  { %v454_v8 = vadd.f32 1e-05, %v447_v12  ;;  %v409_v21 = vpop.xlane.xlu1 %408  ;;  %v1249_v50 = vmul.f32 0.0013020834, %v332_v36  ;;  %v1262_v12 = vrot.slane %v466_v32, %v471_v42  ;;  %v1264_v36 = vrot.slane %v466_v32, %v475_v46  ;;  %s902_s14 = scalar_lea.vmem %s788_s13, 5376  ;;  %p907_p7 = scmp.lt.s32.totalorder %s788_s13, %s788_s13 }
  0xf3   :  { %v435_v1 = vmul.f32 0.0013020834, %v409_v21  ;;  %v1270_v21 = vrot.slane %v466_v32, %v483_v53  ;;  %p903_p6 = scmp.ne.s32.totalorder %s788_s13, %s902_s14  ;;  %p908_p8 = scmp.lt.s32.totalorder %s902_s14, %s902_s14 }
  0xf4   :  { %810 = vrsqrt.f32 %v454_v8  ;;  %v444_v17 = vmul.f32 %v1249_v50, %v1249_v50  ;;  %v1268_v8 = vmul.f32 0.0013020834, %v325_v5 }
  0xf5   :  { %v388_v0 = vpop.xlane.xlu0 %387  ;;  %v449_v10 = vsub.f32 %v435_v1, %v442_v63  ;;  %v1272_v1 = vrot.slane %v466_v32, %v487_v41  ;;  %p909_p9 = por %p908_p8, %p907_p7 }
  0xf6   :  { %v432_v60 = vmul.f32 0.0013020834, %v388_v0  ;;  %v423_v13 = vpop.xlane.xlu1 %422  ;;  %1544 = vst [vmem:[#allocation37_spill] sm:$0xff] %v1268_v8  ;;  %v1292_v42 = vmul.f32 %v1268_v8, %v1268_v8 }
  0xf7   :  { %v456_v33 = vadd.f32 1e-05, %v449_v10  ;;  %v437_v49 = vmul.f32 0.0013020834, %v423_v13  ;;  %v1274_v10 = vrot.slane %v466_v32, %v491_v15  ;;  %v1286_v32 = vrot.slane %v467_v23, %v487_v41  ;;  %p910_p10 = pnand %p909_p9, %p903_p6 }
  0xf8   :  { %v446_v20 = vsub.f32 %v432_v60, %v439_v18  ;;  %v1282_v18 = vrot.slane %v467_v23, %v479_v48  ;;  %v1284_v60 = vrot.slane %v467_v23, %v483_v53 }
  0xf9   :  { %v402_v63 = vpop.xlane.xlu0 %401  ;;  %v451_v0 = vsub.f32 %v437_v49, %v444_v17  ;;  %812 = vrsqrt.f32 %v456_v33  ;;  %v1288_v17 = vrot.slane %v467_v23, %v491_v15 }
  0xfa   :  { %v453_v13 = vadd.f32 1e-05, %v446_v20  ;;  %v434_v7 = vmul.f32 0.0013020834, %v402_v63 }
  0xfb   :  { %v458_v5 = vadd.f32 1e-05, %v451_v0 }
  0xfc   :  { %814 = vrsqrt.f32 %v453_v13  ;;  %v448_v44 = vsub.f32 %v434_v7, %v441_v2 }
  0xfd   :  { %v809_v49 = vpop.eup %808  ;;  %816 = vrsqrt.f32 %v458_v5  ;;  %v416_v46 = vpop.xlane.xlu0 %415 }
  0xfe   :  { %v499_v33 = vmul.f32 %v809_v49, %v1262_v12  ;;  %v500_v48 = vmul.f32 %v809_v49, %v1264_v36  ;;  %v501_v53 = vmul.f32 %v809_v49, %v1266_v19  ;;  %v502_v20 = vmul.f32 %v809_v49, %v1270_v21 }
  0xff   :  { %v503_v7 = vmul.f32 %v809_v49, %v1272_v1  ;;  %v504_v2 = vmul.f32 %v809_v49, %v1274_v10  ;;  %v1300_v41 = vadd.f32 1e-05, %v448_v44  ;;  %v1302_v15 = vmul.f32 0.0013020834, %v416_v46 }
 0x100   :  { %v541_v23 = vmul.f32 %v499_v33, %v1237_v43  ;;  %v542_v63 = vmul.f32 %v500_v48, %v1237_v43  ;;  %v543_v0 = vmul.f32 %v501_v53, %v1237_v43  ;;  %v544_v13 = vmul.f32 %v502_v20, %v1237_v43 }
 0x101   :  { %v545_v5 = vmul.f32 %v503_v7, %v1237_v43  ;;  %v546_v45 = vmul.f32 %v504_v2, %v1237_v43  ;;  %v656_v8 = vmul.f32 %v499_v33, %v1008_v57  ;;  %v657_v49 = vmul.f32 %v500_v48, %v1010_v58  ;;  %v811_v44 = vpop.eup %810 }
 0x102   :  { %v614_v46 = vsub.f32 %v1278_v56, %v541_v23  ;;  %v615_v62 = vsub.f32 %v1280_v39, %v542_v63  ;;  %v616_v16 = vsub.f32 %v1282_v18, %v543_v0  ;;  %v617_v9 = vsub.f32 %v1284_v60, %v544_v13 }
 0x103   :  { %v618_v61 = vsub.f32 %v1286_v32, %v545_v5  ;;  %v619_v22 = vsub.f32 %v1288_v17, %v546_v45  ;;  %v658_v52 = vmul.f32 %v501_v53, %v1012_v59  ;;  %v659_v43 = vmul.f32 %v502_v20, %v1029_v6 }
 0x104   :  { %v660_v57 = vmul.f32 %v503_v7, %v1033_v11  ;;  %v661_v58 = vmul.f32 %v504_v2, %v1041_v38  ;;  %v698_v33 = vadd.f32 %v656_v8, %v614_v46  ;;  %v699_v48 = vadd.f32 %v657_v49, %v615_v62 }
 0x105   :  { %v700_v23 = vadd.f32 %v658_v52, %v616_v16  ;;  %v701_v63 = vadd.f32 %v659_v43, %v617_v9  ;;  %v511_v0 = vmul.f32 %v811_v44, %v1262_v12  ;;  %v512_v13 = vmul.f32 %v811_v44, %v1264_v36 }
 0x106   :  { %v702_v51 = vadd.f32 %v660_v57, %v618_v61  ;;  %v703_v5 = vadd.f32 %v661_v58, %v619_v22  ;;  %740 = vst [vmem:[#allocation10] sm:$0xff] %v698_v33  ;;  %741 = vst [vmem:[#allocation10 + $0x8] sm:$0xff] %v699_v48  ;;  %v513_v59 = vmul.f32 %v811_v44, %v1266_v19  ;;  %v1330_v52 = vpop.eup %812  ;;  %818 = vrsqrt.f32 %v1300_v41 }
 0x107   :  { %v514_v6 = vmul.f32 %v811_v44, %v1270_v21  ;;  %742 = vst [vmem:[#allocation10 + $0x10] sm:$0xff] %v700_v23  ;;  %743 = vst [vmem:[#allocation10 + $0x18] sm:$0xff] %v701_v63  ;;  %v515_v11 = vmul.f32 %v811_v44, %v1272_v1  ;;  %v516_v38 = vmul.f32 %v811_v44, %v1274_v10 }
 0x108   :  { %v553_v45 = vmul.f32 %v511_v0, %v1239_v47  ;;  %v554_v62 = vmul.f32 %v512_v13, %v1239_v47  ;;  %744 = vst [vmem:[#allocation10 + $0x20] sm:$0xff] %v702_v51  ;;  %745 = vst [vmem:[#allocation10 + $0x28] sm:$0xff] %v703_v5  ;;  %v555_v22 = vmul.f32 %v513_v59, %v1239_v47 }
 0x109   :  { %v556_v61 = vmul.f32 %v514_v6, %v1239_v47  ;;  %v668_v9 = vmul.f32 %v511_v0, %v988_v24  ;;  %v669_v16 = vmul.f32 %v512_v13, %v990_v25  ;;  %v815_v8 = vpop.eup %814  ;;  %v557_v53 = vmul.f32 %v515_v11, %v1239_v47 }
 0x10a   :  { %v558_v20 = vmul.f32 %v516_v38, %v1239_v47  ;;  %v626_v7 = vsub.f32 %v1278_v56, %v553_v45  ;;  %v627_v2 = vsub.f32 %v1280_v39, %v554_v62  ;;  %v1340_v49 = vpop.eup %816  ;;  %v628_v51 = vsub.f32 %v1282_v18, %v555_v22 }
 0x10b   :  { %v629_v44 = vsub.f32 %v1284_v60, %v556_v61  ;;  %v670_v46 = vmul.f32 %v513_v59, %v992_v26  ;;  %v671_v24 = vmul.f32 %v514_v6, %v994_v30  ;;  %v630_v25 = vsub.f32 %v1286_v32, %v557_v53  ;;  %v1546_v53 = vld [vmem:[#allocation22_spill] sm:$0xff] }
 0x10c   :  { %v631_v43 = vsub.f32 %v1288_v17, %v558_v20  ;;  %v672_v47 = vmul.f32 %v515_v11, %v998_v34  ;;  %v673_v57 = vmul.f32 %v516_v38, %v1000_v35  ;;  %v710_v58 = vadd.f32 %v668_v9, %v626_v7  ;;  %v1545_v38 = vld [vmem:[#allocation21_spill] sm:$0xff]  ;;  %v1547_v7 = vld [vmem:[#allocation23_spill] sm:$0xff] }
 0x10d   :  { %v711_v33 = vadd.f32 %v669_v16, %v627_v2  ;;  %v712_v48 = vadd.f32 %v670_v46, %v628_v51  ;;  %v713_v23 = vadd.f32 %v671_v24, %v629_v44  ;;  %v505_v13 = vmul.f32 %v815_v8, %v1262_v12 }
 0x10e   :  { %v714_v63 = vadd.f32 %v672_v47, %v630_v25  ;;  %v715_v0 = vadd.f32 %v673_v57, %v631_v43  ;;  %v506_v26 = vmul.f32 %v815_v8, %v1264_v36  ;;  %752 = vst [vmem:[#allocation10 + $0x60] sm:$0xff] %v710_v58  ;;  %v507_v30 = vmul.f32 %v815_v8, %v1266_v19  ;;  %v1548_v25 = vld [vmem:[#allocation24_spill] sm:$0xff] }
 0x10f   :  { %753 = vst [vmem:[#allocation10 + $0x68] sm:$0xff] %v711_v33  ;;  %754 = vst [vmem:[#allocation10 + $0x70] sm:$0xff] %v712_v48  ;;  %v508_v34 = vmul.f32 %v815_v8, %v1270_v21  ;;  %v509_v35 = vmul.f32 %v815_v8, %v1272_v1  ;;  %v510_v5 = vmul.f32 %v815_v8, %v1274_v10 }
 0x110   :  { %755 = vst [vmem:[#allocation10 + $0x78] sm:$0xff] %v713_v23  ;;  %756 = vst [vmem:[#allocation10 + $0x80] sm:$0xff] %v714_v63  ;;  %v547_v59 = vmul.f32 %v505_v13, %v1247_v29  ;;  %v548_v6 = vmul.f32 %v506_v26, %v1247_v29  ;;  %v662_v11 = vmul.f32 %v505_v13, %v1074_v31 }
 0x111   :  { %757 = vst [vmem:[#allocation10 + $0x88] sm:$0xff] %v715_v0  ;;  %v663_v45 = vmul.f32 %v506_v26, %v1545_v38  ;;  %v549_v62 = vmul.f32 %v507_v30, %v1247_v29  ;;  %v550_v22 = vmul.f32 %v508_v34, %v1247_v29  ;;  %v551_v61 = vmul.f32 %v509_v35, %v1247_v29 }
 0x112   :  { %v552_v9 = vmul.f32 %v510_v5, %v1247_v29  ;;  %v620_v16 = vsub.f32 %v1278_v56, %v547_v59  ;;  %v621_v8 = vsub.f32 %v1280_v39, %v548_v6  ;;  %v664_v20 = vmul.f32 %v507_v30, %v1546_v53 }
 0x113   :  { %v665_v2 = vmul.f32 %v508_v34, %v1547_v7  ;;  %v622_v31 = vsub.f32 %v1282_v18, %v549_v62  ;;  %v623_v51 = vsub.f32 %v1284_v60, %v550_v22  ;;  %v624_v44 = vsub.f32 %v1286_v32, %v551_v61 }
 0x114   :  { %v625_v46 = vsub.f32 %v1288_v17, %v552_v9  ;;  %v666_v24 = vmul.f32 %v509_v35, %v1098_v55  ;;  %v667_v29 = vmul.f32 %v510_v5, %v1548_v25  ;;  %v704_v43 = vadd.f32 %v662_v11, %v620_v16 }
 0x115   :  { %v705_v47 = vadd.f32 %v663_v45, %v621_v8  ;;  %v706_v57 = vadd.f32 %v664_v20, %v622_v31  ;;  %v707_v58 = vadd.f32 %v665_v2, %v623_v51  ;;  %v523_v33 = vmul.f32 %v1330_v52, %v1262_v12 }
 0x116   :  { %v524_v48 = vmul.f32 %v1330_v52, %v1264_v36  ;;  %v708_v23 = vadd.f32 %v666_v24, %v624_v44  ;;  %v709_v63 = vadd.f32 %v667_v29, %v625_v46  ;;  %746 = vst [vmem:[#allocation10 + $0x30] sm:$0xff] %v704_v43  ;;  %v525_v0 = vmul.f32 %v1330_v52, %v1266_v19 }
 0x117   :  { %747 = vst [vmem:[#allocation10 + $0x38] sm:$0xff] %v705_v47  ;;  %v526_v55 = vmul.f32 %v1330_v52, %v1270_v21  ;;  %748 = vst [vmem:[#allocation10 + $0x40] sm:$0xff] %v706_v57  ;;  %v527_v13 = vmul.f32 %v1330_v52, %v1272_v1  ;;  %v528_v26 = vmul.f32 %v1330_v52, %v1274_v10 }
 0x118   :  { %749 = vst [vmem:[#allocation10 + $0x48] sm:$0xff] %v707_v58  ;;  %v565_v30 = vmul.f32 %v523_v33, %v1245_v28  ;;  %v566_v34 = vmul.f32 %v524_v48, %v1245_v28  ;;  %750 = vst [vmem:[#allocation10 + $0x50] sm:$0xff] %v708_v23  ;;  %v567_v35 = vmul.f32 %v525_v0, %v1245_v28 }
 0x119   :  { %751 = vst [vmem:[#allocation10 + $0x58] sm:$0xff] %v709_v63  ;;  %v568_v5 = vmul.f32 %v526_v55, %v1245_v28  ;;  %v680_v59 = vmul.f32 %v523_v33, %v1137_v37  ;;  %v681_v6 = vmul.f32 %v524_v48, %v1139_v4  ;;  %v569_v11 = vmul.f32 %v527_v13, %v1245_v28  ;;  %v1550_v48 = vld [vmem:[#allocation32_spill] sm:$0xff] }
 0x11a   :  { %v570_v38 = vmul.f32 %v528_v26, %v1245_v28  ;;  %v638_v52 = vsub.f32 %v1278_v56, %v565_v30  ;;  %v639_v45 = vsub.f32 %v1280_v39, %v566_v34  ;;  %v640_v62 = vsub.f32 %v1282_v18, %v567_v35  ;;  %v1553_v30 = vld [vmem:[#allocation35_spill] sm:$0xff] }
 0x11b   :  { %v641_v22 = vsub.f32 %v1284_v60, %v568_v5  ;;  %v682_v61 = vmul.f32 %v525_v0, %v1141_v40  ;;  %v683_v9 = vmul.f32 %v526_v55, %v1152_v14  ;;  %v642_v37 = vsub.f32 %v1286_v32, %v569_v11  ;;  %v1551_v55 = vld [vmem:[#allocation33_spill] sm:$0xff] }
 0x11c   :  { %v643_v4 = vsub.f32 %v1288_v17, %v570_v38  ;;  %v684_v16 = vmul.f32 %v527_v13, %v1160_v3  ;;  %v685_v28 = vmul.f32 %v528_v26, %v1162_v54  ;;  %v722_v8 = vadd.f32 %v680_v59, %v638_v52  ;;  %v1552_v26 = vld [vmem:[#allocation34_spill] sm:$0xff] }
 0x11d   :  { %v723_v53 = vadd.f32 %v681_v6, %v639_v45  ;;  %v724_v20 = vadd.f32 %v682_v61, %v640_v62  ;;  %v725_v7 = vadd.f32 %v683_v9, %v641_v22  ;;  %v535_v40 = vmul.f32 %v1340_v49, %v1262_v12  ;;  %v819_v45 = vpop.eup %818 }
 0x11e   :  { %v726_v2 = vadd.f32 %v684_v16, %v642_v37  ;;  %v727_v31 = vadd.f32 %v685_v28, %v643_v4  ;;  %764 = vst [vmem:[#allocation10 + $0xc0] sm:$0xff] %v722_v8  ;;  %v536_v14 = vmul.f32 %v1340_v49, %v1264_v36  ;;  %v537_v3 = vmul.f32 %v1340_v49, %v1266_v19  ;;  %v1554_v16 = vld [vmem:[#allocation36_spill] sm:$0xff] }
 0x11f   :  { %765 = vst [vmem:[#allocation10 + $0xc8] sm:$0xff] %v723_v53  ;;  %766 = vst [vmem:[#allocation10 + $0xd0] sm:$0xff] %v724_v20  ;;  %v538_v54 = vmul.f32 %v1340_v49, %v1270_v21  ;;  %v539_v51 = vmul.f32 %v1340_v49, %v1272_v1  ;;  %v540_v41 = vmul.f32 %v1340_v49, %v1274_v10  ;;  %v1549_v49 = vld [vmem:[#allocation31_spill] sm:$0xff] }
 0x120   :  { %767 = vst [vmem:[#allocation10 + $0xd8] sm:$0xff] %v725_v7  ;;  %768 = vst [vmem:[#allocation10 + $0xe0] sm:$0xff] %v726_v2  ;;  %v577_v44 = vmul.f32 %v535_v40, %v1249_v50  ;;  %v692_v46 = vmul.f32 %v535_v40, %v1175_v27  ;;  %v450_v24 = vsub.f32 %v1302_v15, %v1292_v42 }
 0x121   :  { %769 = vst [vmem:[#allocation10 + $0xe8] sm:$0xff] %v727_v31  ;;  %v578_v25 = vmul.f32 %v536_v14, %v1249_v50  ;;  %v579_v29 = vmul.f32 %v537_v3, %v1249_v50  ;;  %v580_v43 = vmul.f32 %v538_v54, %v1249_v50  ;;  %v581_v47 = vmul.f32 %v539_v51, %v1249_v50  ;;  %v1555_v31 = vld [vmem:[#allocation15_spill] sm:$0xff] }
 0x122   :  { %v582_v57 = vmul.f32 %v540_v41, %v1249_v50  ;;  %v650_v58 = vsub.f32 %v1278_v56, %v577_v44  ;;  %v693_v33 = vmul.f32 %v536_v14, %v1549_v49  ;;  %v694_v23 = vmul.f32 %v537_v3, %v1550_v48  ;;  %v1556_v14 = vld [vmem:[#allocation16_spill] sm:$0xff] }
 0x123   :  { %v651_v27 = vsub.f32 %v1280_v39, %v578_v25  ;;  %v652_v42 = vsub.f32 %v1282_v18, %v579_v29  ;;  %v653_v15 = vsub.f32 %v1284_v60, %v580_v43  ;;  %v654_v63 = vsub.f32 %v1286_v32, %v581_v47  ;;  %v1557_v25 = vld [vmem:[#allocation17_spill] sm:$0xff]  ;;  %v1558_v43 = vld [vmem:[#allocation18_spill] sm:$0xff]  ;;  %v1560_v49 = vld [vmem:[#allocation20_spill] sm:$0xff] }
 0x124   :  { %v655_v0 = vsub.f32 %v1288_v17, %v582_v57  ;;  %v695_v13 = vmul.f32 %v538_v54, %v1551_v55  ;;  %v696_v50 = vmul.f32 %v539_v51, %v1552_v26  ;;  %v697_v34 = vmul.f32 %v540_v41, %v1553_v30  ;;  %v1559_v57 = vld [vmem:[#allocation19_spill] sm:$0xff] }
 0x125   :  { %v734_v35 = vadd.f32 %v692_v46, %v650_v58  ;;  %v735_v5 = vadd.f32 %v693_v33, %v651_v27  ;;  %v736_v59 = vadd.f32 %v694_v23, %v652_v42  ;;  %v457_v6 = vadd.f32 1e-05, %v450_v24 }
 0x126   :  { %v737_v11 = vadd.f32 %v695_v13, %v653_v15  ;;  %v738_v38 = vadd.f32 %v696_v50, %v654_v63  ;;  %v739_v52 = vadd.f32 %v697_v34, %v655_v0  ;;  %v517_v62 = vmul.f32 %v819_v45, %v1262_v12 }
 0x127   :  { %776 = vst [vmem:[#allocation10 + $0x120] sm:$0xff] %v734_v35  ;;  %777 = vst [vmem:[#allocation10 + $0x128] sm:$0xff] %v735_v5  ;;  %820 = vrsqrt.f32 %v457_v6  ;;  %v518_v22 = vmul.f32 %v819_v45, %v1264_v36  ;;  %v519_v61 = vmul.f32 %v819_v45, %v1266_v19  ;;  %v520_v9 = vmul.f32 %v819_v45, %v1270_v21  ;;  %v1561_v35 = vld [vmem:[#allocation37_spill] sm:$0xff] }
 0x128   :  { %778 = vst [vmem:[#allocation10 + $0x130] sm:$0xff] %v736_v59  ;;  %779 = vst [vmem:[#allocation10 + $0x138] sm:$0xff] %v737_v11  ;;  %v521_v37 = vmul.f32 %v819_v45, %v1272_v1  ;;  %v522_v4 = vmul.f32 %v819_v45, %v1274_v10  ;;  %v559_v28 = vmul.f32 %v517_v62, %v1554_v16  ;;  %v1562_v11 = vld [vmem:[#allocation25_spill] sm:$0xff] }
 0x129   :  { %780 = vst [vmem:[#allocation10 + $0x140] sm:$0xff] %v738_v38  ;;  %781 = vst [vmem:[#allocation10 + $0x148] sm:$0xff] %v739_v52  ;;  %v560_v8 = vmul.f32 %v518_v22, %v1554_v16  ;;  %v561_v53 = vmul.f32 %v519_v61, %v1554_v16  ;;  %v562_v20 = vmul.f32 %v520_v9, %v1554_v16  ;;  %v1563_v38 = vld [vmem:[#allocation26_spill] sm:$0xff] }
 0x12a   :  { %v563_v7 = vmul.f32 %v521_v37, %v1554_v16  ;;  %v564_v2 = vmul.f32 %v522_v4, %v1554_v16  ;;  %v674_v40 = vmul.f32 %v517_v62, %v1555_v31  ;;  %v675_v3 = vmul.f32 %v518_v22, %v1556_v14 }
 0x12b   :  { %v632_v54 = vsub.f32 %v1278_v56, %v559_v28  ;;  %v633_v51 = vsub.f32 %v1280_v39, %v560_v8  ;;  %v634_v41 = vsub.f32 %v1282_v18, %v561_v53  ;;  %v635_v44 = vsub.f32 %v1284_v60, %v562_v20  ;;  %v1566_v28 = vld [vmem:[#allocation29_spill] sm:$0xff]  ;;  %v1567_v53 = vld [vmem:[#allocation30_spill] sm:$0xff] }
 0x12c   :  { %v636_v46 = vsub.f32 %v1286_v32, %v563_v7  ;;  %v637_v24 = vsub.f32 %v1288_v17, %v564_v2  ;;  %v676_v29 = vmul.f32 %v519_v61, %v1557_v25  ;;  %v677_v47 = vmul.f32 %v520_v9, %v1558_v43  ;;  %v1564_v9 = vld [vmem:[#allocation27_spill] sm:$0xff] }
 0x12d   :  { %v678_v58 = vmul.f32 %v521_v37, %v1559_v57  ;;  %v679_v33 = vmul.f32 %v522_v4, %v1560_v49  ;;  %v716_v48 = vadd.f32 %v674_v40, %v632_v54  ;;  %v717_v23 = vadd.f32 %v675_v3, %v633_v51  ;;  %v1565_v4 = vld [vmem:[#allocation28_spill] sm:$0xff] }
 0x12e   :  { %v718_v27 = vadd.f32 %v676_v29, %v634_v41  ;;  %v719_v42 = vadd.f32 %v677_v47, %v635_v44 }
 0x12f   :  { %v720_v63 = vadd.f32 %v678_v58, %v636_v46  ;;  %v721_v0 = vadd.f32 %v679_v33, %v637_v24  ;;  %758 = vst [vmem:[#allocation10 + $0x90] sm:$0xff] %v716_v48  ;;  %759 = vst [vmem:[#allocation10 + $0x98] sm:$0xff] %v717_v23 }
 0x130   :  { %760 = vst [vmem:[#allocation10 + $0xa0] sm:$0xff] %v718_v27  ;;  %761 = vst [vmem:[#allocation10 + $0xa8] sm:$0xff] %v719_v42 }
 0x131   :  { %762 = vst [vmem:[#allocation10 + $0xb0] sm:$0xff] %v720_v63  ;;  %763 = vst [vmem:[#allocation10 + $0xb8] sm:$0xff] %v721_v0 }
 0x134   :  { %v821_v15 = vpop.eup %820 }
 0x135   :  { %v529_v55 = vmul.f32 %v821_v15, %v1262_v12  ;;  %v530_v13 = vmul.f32 %v821_v15, %v1264_v36  ;;  %v531_v26 = vmul.f32 %v821_v15, %v1266_v19  ;;  %v532_v50 = vmul.f32 %v821_v15, %v1270_v21 }
 0x136   :  { %v533_v30 = vmul.f32 %v821_v15, %v1272_v1  ;;  %v534_v34 = vmul.f32 %v821_v15, %v1274_v10 }
 0x137   :  { %v571_v5 = vmul.f32 %v529_v55, %v1561_v35  ;;  %v572_v59 = vmul.f32 %v530_v13, %v1561_v35  ;;  %v573_v6 = vmul.f32 %v531_v26, %v1561_v35  ;;  %v574_v12 = vmul.f32 %v532_v50, %v1561_v35 }
 0x138   :  { %v575_v36 = vmul.f32 %v533_v30, %v1561_v35  ;;  %v576_v19 = vmul.f32 %v534_v34, %v1561_v35  ;;  %v686_v21 = vmul.f32 %v529_v55, %v1562_v11  ;;  %v687_v52 = vmul.f32 %v530_v13, %v1563_v38 }
 0x139   :  { %v644_v1 = vsub.f32 %v1278_v56, %v571_v5  ;;  %v645_v10 = vsub.f32 %v1280_v39, %v572_v59  ;;  %v646_v45 = vsub.f32 %v1282_v18, %v573_v6  ;;  %v647_v62 = vsub.f32 %v1284_v60, %v574_v12 }
 0x13a   :  { %v648_v22 = vsub.f32 %v1286_v32, %v575_v36  ;;  %v649_v61 = vsub.f32 %v1288_v17, %v576_v19  ;;  %v688_v37 = vmul.f32 %v531_v26, %v1564_v9  ;;  %v689_v16 = vmul.f32 %v532_v50, %v1565_v4 }
 0x13b   :  { %v690_v8 = vmul.f32 %v533_v30, %v1566_v28  ;;  %v691_v56 = vmul.f32 %v534_v34, %v1567_v53  ;;  %v728_v20 = vadd.f32 %v686_v21, %v644_v1  ;;  %v729_v39 = vadd.f32 %v687_v52, %v645_v10 }
 0x13c   :  { %v730_v7 = vadd.f32 %v688_v37, %v646_v45  ;;  %v731_v18 = vadd.f32 %v689_v16, %v647_v62 }
 0x13d   :  { %v732_v2 = vadd.f32 %v690_v8, %v648_v22  ;;  %v733_v60 = vadd.f32 %v691_v56, %v649_v61  ;;  %770 = vst [vmem:[#allocation10 + $0xf0] sm:$0xff] %v728_v20  ;;  %771 = vst [vmem:[#allocation10 + $0xf8] sm:$0xff] %v729_v39 }
 0x13e   :  { %772 = vst [vmem:[#allocation10 + $0x100] sm:$0xff] %v730_v7  ;;  %773 = vst [vmem:[#allocation10 + $0x108] sm:$0xff] %v731_v18 }
 0x13f   :  { %774 = vst [vmem:[#allocation10 + $0x110] sm:$0xff] %v732_v2  ;;  %775 = vst [vmem:[#allocation10 + $0x118] sm:$0xff] %v733_v60 }
 0x140   :  { %913 = shalt.err (!%p910_p10)
}
 0x141   :  { %793 = dma.vmem_to_hbm [thread:$0]  %s788_s13, 5376, %s1496_s5, [#allocation4], %s932_s23, %s932_s23, %s933_s24  }
 0x142   :  { %928 = dma.done.wait [#allocation4], 5376  }
 0x143   :  { %929 = vsyncadd [#allocation4], 4294961920 }
 0x144   :  { %797 = vsyncpa [#allocation3], 1 }
 0x145   :  { %798 = vsyncpa [#allocation6], 1 }
 0x146   :  { %799 = vsyncpa [#allocation9], 1 }
 0x147   :  { %800 = vsyncpa [#allocation4], 1 }

</bundles_post_ra>
